<compile_context>
chip_gen: v7x
topology: tpu7x:2x2x1
jax: 0.10.0
libtpu: 0.0.40
codegen_flags: <defaults>
</compile_context>

<pallas_src>
import jax
import jax.numpy as jnp
from jax.experimental import pallas as pl
from jax.experimental.pallas import tpu as pltpu


def _matmul_bias_kernel(x_ref, w_ref, b_ref, o_ref):
    # x_ref: (TR, K), w_ref: (K, N), b_ref: (1, N), o_ref: (TR, N)
    acc = jnp.dot(x_ref[...], w_ref[...], preferred_element_type=jnp.float32)
    o_ref[...] = (acc + b_ref[...]).astype(o_ref.dtype)


def _pick_row_tile(rows):
    """Largest row tile (multiple of 8) dividing `rows`; prefer >= 2 grid steps
    so v7x megacore can shard the parallel axis across its two TensorCores."""
    for tr in (512, 256, 128, 64, 32, 16, 8):
        if rows % tr == 0 and rows // tr >= 2:
            return tr
    for tr in (512, 256, 128, 64, 32, 16, 8):
        if rows % tr == 0:
            return tr
    return rows  # ragged: single full-extent block (allowed by the (8,128) rule)


def _rows_matmul_bias(x2d, w, bias_row, out_dtype):
    """(M, K) @ (K, N) + bias_row, tiled over rows with a Pallas kernel."""
    M, K = x2d.shape
    _, N = w.shape
    tr = _pick_row_tile(M)
    return pl.pallas_call(
        _matmul_bias_kernel,
        out_shape=jax.ShapeDtypeStruct((M, N), out_dtype),
        grid_spec=pltpu.PrefetchScalarGridSpec(
            num_scalar_prefetch=0,
            grid=(M // tr,),
            in_specs=[
                pl.BlockSpec((tr, K), lambda i: (i, 0)),
                pl.BlockSpec((K, N), lambda i: (0, 0)),   # grid-invariant weight
                pl.BlockSpec((1, N), lambda i: (0, 0)),   # grid-invariant bias row
            ],
            out_specs=pl.BlockSpec((tr, N), lambda i: (i, 0)),
        ),
        compiler_params=pltpu.CompilerParams(
            dimension_semantics=("parallel",),
        ),
    )(x2d, w, bias_row)


def conv_transpose2d(x_nchw, weight, bias, stride):
    """PyTorch-equivalent nn.ConvTranspose2d(kernel_size=K, stride=stride, padding=0).

    x_nchw: (B, Cin, H, W); weight: (Cin, Cout, KH, KW); bias: (Cout,)
    Returns NCHW output to match PyTorch.
    """
    B, Cin, H, W = x_nchw.shape
    Cin_w, Cout, KH, KW = weight.shape
    assert Cin == Cin_w
    s = int(stride)
    OH = (H - 1) * s + KH
    OW = (W - 1) * s + KW

    cdt = jnp.result_type(x_nchw.dtype, weight.dtype)       # matmul input dtype
    out_dtype = jnp.result_type(cdt, bias.dtype)

    # ---- fused depth-to-space path: stride == kernel => no overlap, no gaps ----
    wbig_bytes = (W * Cin) * (KH * W * KW * Cout) * jnp.dtype(cdt).itemsize
    if s == KH == KW and wbig_bytes <= 8 * 1024 * 1024:
        # x rows: (B*H, W*Cin)   [element (w*Cin + ci) = x[b, ci, ih, w]]
        x2d = x_nchw.transpose(0, 2, 3, 1).reshape(B * H, W * Cin).astype(cdt)

        # Block-diagonal-over-W weight: (W*Cin, KH*W*KW*Cout)
        #   wbig[w*Cin+ci, ((kh*W + w)*KW + kw)*Cout + co] = weight[ci, co, kh, kw]
        wt = weight.transpose(0, 2, 3, 1).astype(cdt)        # (Cin, KH, KW, Cout)
        eye_w = jnp.eye(W, dtype=cdt)
        wbig = jnp.einsum("wv,chko->wchvko", eye_w, wt).reshape(
            W * Cin, KH * W * KW * Cout)

        # Bias replicated along the output row (added once per output element,
        # in-kernel, riding the otherwise-idle VPU slot).
        bias_row = jnp.tile(bias.astype(jnp.float32), KH * W * KW).reshape(1, -1)

        # Each input row (b, ih) -> KH final output rows, already in NHWC order.
        out2d = _rows_matmul_bias(x2d, wbig, bias_row, out_dtype)  # (B*H, KH*OW*Cout)
        out_nhwc = out2d.reshape(B, OH, OW, Cout)                  # pure reshape
        return out_nhwc.transpose(0, 3, 1, 2)                      # NHWC -> NCHW

    # ---- general fallback: per-pixel matmul + overlap-add glue (stride != K) ----
    # TODO(synk): fuse the overlap-add into the kernel for stride < kernel too.
    x_flat = x_nchw.transpose(0, 2, 3, 1).reshape(B * H * W, Cin).astype(cdt)
    w_mat = weight.transpose(0, 2, 3, 1).reshape(Cin, KH * KW * Cout).astype(cdt)
    zero_bias = jnp.zeros((1, KH * KW * Cout), jnp.float32)
    y = _rows_matmul_bias(x_flat, w_mat, zero_bias, jnp.float32)
    y = y.reshape(B, H, W, KH, KW, Cout)
    out = jnp.broadcast_to(bias.astype(jnp.float32), (B, OH, OW, Cout))
    for kh in range(KH):
        for kw in range(KW):
            out = out.at[
                :, kh: kh + (H - 1) * s + 1: s, kw: kw + (W - 1) * s + 1: s, :
            ].add(y[:, :, :, kh, kw, :])
    return out.astype(out_dtype).transpose(0, 3, 1, 2)


if __name__ == "__main__":
    # Upsample(input_dim=4, output_dim=8, kernel=2, stride=2)
    B, Cin, H, W = 2, 4, 16, 16
    Cout, K, stride = 8, 2, 2

    key = jax.random.PRNGKey(0)
    kx, kw_, kb = jax.random.split(key, 3)
    x = jax.random.normal(kx, (B, Cin, H, W), jnp.float32)
    # ConvTranspose2d weight shape: (in_channels, out_channels, KH, KW)
    weight = 0.1 * jax.random.normal(kw_, (Cin, Cout, K, K), jnp.float32)
    bias = 0.1 * jax.random.normal(kb, (Cout,), jnp.float32)

    out = conv_transpose2d(x, weight, bias, stride)
    out = jax.block_until_ready(out)

    # Reference: transposed conv == lhs-dilated conv with spatially flipped,
    # in/out-swapped kernel (matches PyTorch ConvTranspose2d semantics).
    ref = jax.lax.conv_general_dilated(
        x,
        jnp.flip(weight, (2, 3)).transpose(1, 0, 2, 3),
        window_strides=(1, 1),
        padding=((K - 1, K - 1), (K - 1, K - 1)),
        lhs_dilation=(stride, stride),
        dimension_numbers=("NCHW", "OIHW", "NCHW"),
    ) + bias[None, :, None, None]

    assert out.shape == (B, Cout, (H - 1) * stride + K, (W - 1) * stride + K), out.shape
    assert jnp.allclose(out, ref, atol=1e-4, rtol=1e-4), float(jnp.max(jnp.abs(out - ref)))
    print("KERNEL_OK")
</pallas_src>

<mosaic_0001>
module attributes {stable_mosaic.version = 11 : i64} {
  func.func @_matmul_bias_kernel(%arg0: i32, %arg1: memref<16x64xf32, #tpu.memory_space<vmem>>, %arg2: memref<64x512xf32, #tpu.memory_space<vmem>>, %arg3: memref<1x512xf32, #tpu.memory_space<vmem>>, %arg4: memref<16x512xf32, #tpu.memory_space<vmem>>) attributes {dimension_semantics = [#tpu.dimension_semantics<parallel>], iteration_bounds = array<i64: 2>, scalar_prefetch = 0 : i64, scratch_operands = 0 : i64, tpu.core_type = #tpu.core_type<tc>, window_params = [{transform_indices = @transform_0, window_bounds = array<i64: 16, 64>}, {pipeline_mode = #tpu.pipeline_mode<synchronous>, transform_indices = @transform_1, window_bounds = array<i64: 64, 512>}, {pipeline_mode = #tpu.pipeline_mode<synchronous>, transform_indices = @transform_2, window_bounds = array<i64: 1, 512>}, {transform_indices = @transform_3, window_bounds = array<i64: 16, 512>}]} {
    %c0 = arith.constant 0 : index
    %c0_0 = arith.constant 0 : index
    %0 = vector.load %arg1[%c0, %c0_0] : memref<16x64xf32, #tpu.memory_space<vmem>>, vector<16x64xf32>
    %c0_1 = arith.constant 0 : index
    %c0_2 = arith.constant 0 : index
    %1 = vector.load %arg2[%c0_1, %c0_2] : memref<64x512xf32, #tpu.memory_space<vmem>>, vector<64x512xf32>
    %cst = arith.constant dense<0.000000e+00> : vector<16x512xf32>
    %2 = tpu.matmul %0, %1, %cst {dimension_numbers = #tpu.dot_dimension_numbers<[1], [0], [0], [1], [0, 0, 1, 1], [], []>} : vector<16x64xf32>, vector<64x512xf32>, vector<16x512xf32> -> vector<16x512xf32>
    %c0_3 = arith.constant 0 : index
    %c0_4 = arith.constant 0 : index
    %3 = vector.load %arg3[%c0_3, %c0_4] : memref<1x512xf32, #tpu.memory_space<vmem>>, vector<1x512xf32>
    %4 = vector.broadcast %3 : vector<1x512xf32> to vector<16x512xf32>
    %5 = arith.addf %2, %4 : vector<16x512xf32>
    %c0_5 = arith.constant 0 : index
    %c0_6 = arith.constant 0 : index
    %6 = vector.load %arg4[%c0_5, %c0_6] : memref<16x512xf32, #tpu.memory_space<vmem>>, vector<16x512xf32>
    tpu.vector_store %arg4[%c0_5, %c0_6], %5 {strides = array<i32>} : memref<16x512xf32, #tpu.memory_space<vmem>>, vector<16x512xf32>,
    return
  }
  func.func @transform_0(%arg0: i32) -> (i32, i32) {
    %c0_i32 = arith.constant 0 : i32
    %c0_i32_0 = arith.constant 0 : i32
    return %arg0, %c0_i32 : i32, i32
  }
  func.func @transform_1(%arg0: i32) -> (i32, i32) {
    %c0_i32 = arith.constant 0 : i32
    %c0_i32_0 = arith.constant 0 : i32
    %c0_i32_1 = arith.constant 0 : i32
    return %c0_i32, %c0_i32_0 : i32, i32
  }
  func.func @transform_2(%arg0: i32) -> (i32, i32) {
    %c0_i32 = arith.constant 0 : i32
    %c0_i32_0 = arith.constant 0 : i32
    %c0_i32_1 = arith.constant 0 : i32
    return %c0_i32, %c0_i32_0 : i32, i32
  }
  func.func @transform_3(%arg0: i32) -> (i32, i32) {
    %c0_i32 = arith.constant 0 : i32
    %c0_i32_0 = arith.constant 0 : i32
    return %arg0, %c0_i32 : i32, i32
  }
}

</mosaic_0001>

<bundles_post_ra>
// kernel: tpu_custom_call.1
= control target key start
LH: loop header
LB: loop body
LE: loop exit
PB: predicated region body
PF: predicated region fallthrough
CT: control target
= control target key end

     0   :  { %8 = vsyncpa [#allocation3], 0  ;;  %s1022_s0 = inlined_call_operand.hbm [shape: f32[32,64], index: 0, kind: input, shape index: {}]   ;;  %s1023_s1 = inlined_call_operand.hbm [shape: f32[64,512], index: 1, kind: input, shape index: {}]   ;;  %s1024_s2 = inlined_call_operand.vmem [shape: f32[1,512], index: 2, kind: input, shape index: {}]   ;;  %s1025_s3 = inlined_call_operand.hbm [shape: f32[32,512], index: 3, kind: output, shape index: {}]  }
   0x1   :  { %10 = vsyncpa [#allocation3 + $0x1], 0 }
   0x2   :  { %11 = vsyncpa [#allocation6], 0 }
   0x3   :  { %12 = vsyncpa [#allocation4], 0 }
   0x4   :  { %14 = vsyncpa [#allocation4 + $0x1], 0  ;;  %s809_s12 = smov 0   ;;  %s811_s13 = smov 0  }
   0x5   :  { %s813_s14 = smov 0   ;;  %s815_s15 = smov 0  }
   0x6 LB: > { %s830_s16 = sadd.s32 4294967295, %s777_s15   ;;  %s529_s17 = sadd.s32 4294967294, %s777_s15   ;;  %s777_s15 = sphi %s815_s15, %s1045_s15   ;;  %s773_s14 = sphi %s813_s14, %s1044_s14   ;;  %s769_s13 = sphi %s811_s13, %s1043_s13   ;;  %s765_s12 = sphi %s809_s12, %s1042_s12  }
   0x7   : > { %p40_p0 = scmp.ne.s32.totalorder %s769_s13, %s765_s12  ;;  %p1026_p1 = scmp.eq.s32.totalorder %s830_s16, 0 }
   0x8   : > { %p112_p3 = scmp.eq.s32.totalorder %s529_s17, 1  ;;  %p530_p5 = scmp.ge.s32.totalorder %s777_s15, 1 }
   0x9   : > { %p839_p4 = por %p1026_p1, %p40_p0  ;;  %p119_p7 = scmp.lt.s32.totalorder %s777_s15, 3 }
   0xa   : > { %p844_p6 = por %p112_p3, %p40_p0  ;;  %s779_s21 = smov [#allocation5]  }
   0xb   : > { %s1029_s18 = scalar_select %p839_p4, 1, 0 }
   0xc   : > { %s1030_s19 = scalar_select %p844_p6, 1, 0 }
   0xd   : > { %p849_p8 = pnand %p530_p5, %p119_p7  ;;  %s131_s22 = sshll.u32 %s779_s21, 4  ;;  %s853_s22 = int_to_ptr.vmem [resolvable:$true] %s131_s22 }
   0xe   : > { %s865_s24 = sadd.s32 1, %s777_s15   ;;  %s27_s25 = sadd.s32 1, %s773_s14 }
   0xf   : > { %s1031_s20 = scalar_select %p849_p8, 1, 0 }
  0x10   : > { %p593_p9 = pneg %p849_p8  ;;  %s24_s26 = ssub.s32 %s777_s15, %s865_s24 }
  0x11   : > { %s649_s29 = scalar_lea.hbm %s1023_s1, 4096 }
  0x12   : > { %p860_p11 = pnand %p593_p9, %p1026_p1  ;;  %p650_p12 = scmp.ne.s32.totalorder %s1023_s1, %s649_s29 }
  0x13   : > { %p656_p5 = scmp.lt.u32.totalorder %s649_s29, %s1023_s1 }
  0x14   : > { %p651_p13 = pneg %p860_p11 }
  0x16   : > { %p652_p0 = pnand %p651_p13, %p650_p12 }
  0x18   : > { %p653_p3 = pneg %p652_p0 }
  0x1a   : > { %p658_p7 = pnand %p656_p5, %p653_p3 }
  0x1c   : > { %661 = shalt.err (!%p658_p7)
}
  0x1d   : > { %s662_s7 = scalar_lea.vmem %s853_s22, 4096  ;;  %p670_p2 = scmp.lt.s32.totalorder %s853_s22, %s853_s22 }
  0x1e   : > { %p663_p9 = scmp.ne.s32.totalorder %s853_s22, %s662_s7  ;;  %p671_p6 = scmp.lt.s32.totalorder %s662_s7, %s662_s7 }
  0x20   : > { %p665_p10 = pnand %p663_p9, %p651_p13  ;;  %p672_p4 = por %p671_p6, %p670_p2 }
  0x22   : > { %p666_p1 = pneg %p665_p10 }
  0x24   : > { %p673_p8 = pnand %p672_p4, %p666_p1 }
  0x26   : > { %676 = shalt.err (!%p673_p8)
}
  0x27   : > { %s780_s8 = smov 512   ;;  %s781_s9 = smov 32  }
  0x28   : > { %596 = dma.hbm_to_vmem [thread:$0]  (!%p860_p11), %s1023_s1, 4096, %s853_s22, [#allocation6], %s780_s8, %s780_s8, %s781_s9  }
  0x29   : > { %p25_p2 = scmp.eq.s32.totalorder %s24_s26, 0  ;;  %p34_p1 = scmp.ne.s32.totalorder %s773_s14, %s769_s13 }
  0x2a   : > { %p35_p4 = scmp.eq.s32.totalorder %s777_s15, 0  ;;  %p606_p6 = scmp.lt.s32.totalorder %s777_s15, 2 }
  0x2b   : > { %s896_s17 = scalar_select %p25_p2, %s773_s14, %s27_s25  }
  0x2c   : > { %p36_p8 = por %p35_p4, %p34_p1  ;;  %p1033_p10 = scmp.eq.s32.totalorder %s830_s16, 1 }
  0x2d   : > { %s148_s27 = sand.u32 1, %s773_s14   ;;  %s550_s28 = sshll.u32 %s777_s15, 8 }
  0x2e   : > { %p900_p12 = por %p1033_p10, %p34_p1  ;;  %s533_s29 = sshll.u32 %s148_s27, 4 }
  0x2f   : > { %s909_s4 = scalar_lea.hbm %s1022_s0, %s550_s28  ;;  %s152_s22 = scalar_lea.vmem [#allocation2], %s533_s29 }
  0x30   : > { %s159_s25 = sshll.u32 %s152_s22, 4  ;;  %p911_p11 = pnand %p606_p6, %p36_p8  ;;  %s915_s25 = int_to_ptr.vmem [resolvable:$true] %s159_s25 }
  0x31   : > { %s917_s5 = scalar_lea.sflag [#allocation3], %s148_s27  ;;  %s677_s6 = scalar_lea.hbm %s909_s4, 256 }
  0x32   : > { %p678_p13 = scmp.ne.s32.totalorder %s909_s4, %s677_s6  ;;  %p679_p0 = pneg %p911_p11 }
  0x33   : > { %s682_s9 = scalar_lea.hbm %s1022_s0, 512  ;;  %p683_p7 = scmp.lt.u32.totalorder %s909_s4, %s1022_s0 }
  0x34   : > { %p680_p3 = pnand %p679_p0, %p678_p13  ;;  %p684_p9 = scmp.lt.u32.totalorder %s682_s9, %s677_s6 }
  0x35   : > { %p686_p1 = scmp.lt.u32.totalorder %s677_s6, %s909_s4 }
  0x36   : > { %p681_p5 = pneg %p680_p3  ;;  %p685_p2 = por %p684_p9, %p683_p7 }
  0x38   : > { %p687_p4 = por %p686_p1, %p685_p2 }
  0x3a   : > { %p688_p6 = pnand %p687_p4, %p681_p5 }
  0x3c   : > { %691 = shalt.err (!%p688_p6)
}
  0x3d   : > { %s692_s27 = scalar_lea.vmem %s915_s25, 256  ;;  %s782_s28 = smov [#allocation2]  }
  0x3e   : > { %p693_p8 = scmp.ne.s32.totalorder %s915_s25, %s692_s27  ;;  %s697_s29 = sshll.u32 %s782_s28, 4  ;;  %s698_s29 = int_to_ptr.vmem [resolvable:$false] %s697_s29 }
  0x3f   : > { %s699_s23 = scalar_lea.vmem %s698_s29, 512  ;;  %p700_p3 = scmp.lt.s32.totalorder %s915_s25, %s698_s29 }
  0x40   : > { %p695_p10 = pnand %p693_p8, %p679_p0  ;;  %p701_p7 = scmp.lt.s32.totalorder %s699_s23, %s692_s27 }
  0x42   : > { %p696_p13 = pneg %p695_p10  ;;  %p702_p9 = por %p701_p7, %p700_p3 }
  0x44   : > { %p703_p2 = pnand %p702_p9, %p696_p13 }
  0x46   : > { %706 = shalt.err (!%p703_p2)
}
  0x47   : > { %s783_s30 = smov 128   ;;  %s784_s22 = smov 8  }
  0x48   : > { %600 = dma.hbm_to_vmem [thread:$0]  (!%p911_p11), %s909_s4, 256, %s915_s25, %s917_s5, %s783_s30, %s783_s30, %s784_s22  }
  0x49   : > { %p1036_p0 = scmp.ne.s32.totalorder %s1031_s20, 0 }
  0x4a   : > { %s948_s6 = sand.u32 (!%p1036_p0), 1, %s769_s13   ;;  %p1037_p5 = scmp.ne.s32.totalorder (!%p1036_p0), %s1029_s18, 0 }
  0x4b   : > { %171 = sbr.rel (%p1036_p0) target bundleno = 341 (0x155), region = 32  ;;  %s537_s7 = sshll.u32 (!%p1036_p0), %s948_s6, 4 }
  0x4c   : > { %s174_s8 = scalar_lea.sflag (!%p1036_p0), [#allocation3], %s948_s6  ;;  %s952_s9 = scalar_lea.vmem (!%p1036_p0), [#allocation2], %s537_s7 }
  0x52   : > { %752 = dma.done.wait (%p1037_p5), %s174_s8, 256  }
  0x53   : > { %754 = vsyncadd (%p1037_p5), %s174_s8, 4294967040  ;;  %p1038_p11 = scmp.eq.s32.totalorder %s830_s16, 0 }
  0x55   : > { %756 = dma.done.wait (%p1038_p11), [#allocation6], 4096   ;;  %p1039_p1 = pmov %p1038_p11 }
  0x56   : > { %v785_v0 = vmov 0.0   ;;  %v209_v1 = vld [vmem:[#allocation5 + $0x8] sm:$0xff]  ;;  %v211_v3 = vld [vmem:[#allocation5 + $0x18] sm:$0xff]  ;;  %v208_v6 = vld [vmem:[#allocation5] sm:$0xff]  ;;  %vm262_vm0 = vcmask 523264   ;;  %v242_v51 = vlaneseq  ;;  %s539_s4 = sshll.u32 %s948_s6, 6 }
  0x57   : > { %758 = vsyncadd (%p1039_p1), [#allocation6], 4294963200  ;;  %333 = vmatprep.mubr.f32.mxu0 %v785_v0  ;;  %410 = vmatprep.mubr.f32.mxu1 %v785_v0  ;;  %v213_v2 = vld [vmem:[#allocation5 + $0x28] sm:$0xff]  ;;  %v215_v5 = vld [vmem:[#allocation5 + $0x38] sm:$0xff]  ;;  %s203_s25 = scalar_lea.vmem [#allocation7], %s539_s4  ;;  %s552_s5 = sshll.u32 %s830_s16, 10 }
  0x58   : > { %v553_v4 = vpack.c.bf16 %v213_v2, %v209_v1  ;;  %v212_v7 = vld [vmem:[#allocation5 + $0x20] sm:$0xff]  ;;  %v569_v8 = vpack.c.bf16 %v215_v5, %v211_v3  ;;  %v210_v10 = vld [vmem:[#allocation5 + $0x10] sm:$0xff]  ;;  %v217_v12 = vld [vmem:[#allocation5 + $0x48] sm:$0xff]  ;;  %v243_v52 = vshrl.u32 %v242_v51, 7  ;;  %s446_s26 = sshll.u32 %s203_s25, 4  ;;  %s978_s16 = scalar_lea.hbm %s1025_s3, %s552_s5  ;;  %s973_s26 = int_to_ptr.vmem [resolvable:$true] %s446_s26 }
  0x59   : > { %v555_v9 = vpack.c.bf16 %v212_v7, %v208_v6  ;;  %v214_v11 = vld [vmem:[#allocation5 + $0x30] sm:$0xff]  ;;  %v221_v14 = vld [vmem:[#allocation5 + $0x68] sm:$0xff]  ;;  %v219_v15 = vld [vmem:[#allocation5 + $0x58] sm:$0xff]  ;;  %s432_s27 = scalar_lea.sflag [#allocation4], %s948_s6  ;;  %s707_s28 = scalar_lea.vmem %s973_s26, 1024 }
  0x5a   : > { %554 = vmatprep.subr.bf16.mxu0 %v553_v4  ;;  %v571_v13 = vpack.c.bf16 %v214_v11, %v210_v10  ;;  %v223_v16 = vld [vmem:[#allocation5 + $0x78] sm:$0xff]  ;;  %570 = vmatprep.subr.bf16.mxu1 %v569_v8  ;;  %v557_v17 = vpack.c.bf16 %v221_v14, %v217_v12  ;;  %v216_v19 = vld [vmem:[#allocation5 + $0x40] sm:$0xff]  ;;  %v218_v21 = vld [vmem:[#allocation5 + $0x50] sm:$0xff]  ;;  %v244_v53 = vsub.s32 0, %v243_v52  ;;  %v252_v55 = vsub.s32 2, %v243_v52  ;;  %p708_p4 = scmp.ne.s32.totalorder %s973_s26, %s707_s28  ;;  %s786_s29 = smov [#allocation7]  }
  0x5b   : > { %556 = vmatpush1.bf16.msra.mxu0 %v555_v9  ;;  %v573_v18 = vpack.c.bf16 %v223_v16, %v219_v15  ;;  %v220_v20 = vld [vmem:[#allocation5 + $0x60] sm:$0xff]  ;;  %v222_v23 = vld [vmem:[#allocation5 + $0x70] sm:$0xff]  ;;  %v225_v24 = vld [vmem:[#allocation5 + $0x88] sm:$0xff]  ;;  %v248_v56 = vsub.s32 1, %v243_v52  ;;  %v256_v57 = vsub.s32 3, %v243_v52  ;;  %s711_s23 = sshll.u32 %s786_s29, 4  ;;  %s712_s23 = int_to_ptr.vmem [resolvable:$false] %s711_s23 }
  0x5c   : > { %572 = vmatpush1.bf16.msra.mxu1 %v571_v13  ;;  %v559_v22 = vpack.c.bf16 %v220_v20, %v216_v19  ;;  %v229_v25 = vld [vmem:[#allocation5 + $0xa8] sm:$0xff]  ;;  %558 = vmatprep.subr.bf16.mxu0 %v557_v17  ;;  %v575_v26 = vpack.c.bf16 %v222_v23, %v218_v21  ;;  %v227_v28 = vld [vmem:[#allocation5 + $0x98] sm:$0xff]  ;;  %v224_v30 = vld [vmem:[#allocation5 + $0x80] sm:$0xff]  ;;  %p709_p6 = pnand %p708_p4, %p900_p12  ;;  %s713_s30 = scalar_lea.vmem %s712_s23, 2048 }
  0x5d   : > { %574 = vmatprep.subr.bf16.mxu1 %v573_v18  ;;  %v561_v27 = vpack.c.bf16 %v229_v25, %v225_v24  ;;  %v231_v29 = vld [vmem:[#allocation5 + $0xb8] sm:$0xff]  ;;  %v228_v32 = vld [vmem:[#allocation5 + $0xa0] sm:$0xff]  ;;  %v226_v33 = vld [vmem:[#allocation5 + $0x90] sm:$0xff]  ;;  %p714_p10 = scmp.lt.s32.totalorder %s973_s26, %s712_s23  ;;  %p715_p13 = scmp.lt.s32.totalorder %s713_s30, %s707_s28 }
  0x5e   : > { %v577_v31 = vpack.c.bf16 %v231_v29, %v227_v28  ;;  %v230_v34 = vld [vmem:[#allocation5 + $0xb0] sm:$0xff]  ;;  %v563_v35 = vpack.c.bf16 %v228_v32, %v224_v30  ;;  %v233_v36 = vld [vmem:[#allocation5 + $0xc8] sm:$0xff]  ;;  %v235_v38 = vld [vmem:[#allocation5 + $0xd8] sm:$0xff]  ;;  %p710_p8 = pneg %p709_p6 }
  0x5f   : > { %560 = vmatpush1.bf16.msra.mxu0 %v559_v22  ;;  %v237_v37 = vld [vmem:[#allocation5 + $0xe8] sm:$0xff]  ;;  %v579_v39 = vpack.c.bf16 %v230_v34, %v226_v33  ;;  %v239_v41 = vld [vmem:[#allocation5 + $0xf8] sm:$0xff]  ;;  %v232_v42 = vld [vmem:[#allocation5 + $0xc0] sm:$0xff]  ;;  %p716_p3 = por %p715_p13, %p714_p10 }
  0x60   : > { %576 = vmatpush1.bf16.msra.mxu1 %v575_v26  ;;  %562 = vmatprep.subr.bf16.mxu0 %v561_v27  ;;  %v565_v40 = vpack.c.bf16 %v237_v37, %v233_v36  ;;  %v236_v43 = vld [vmem:[#allocation5 + $0xe0] sm:$0xff]  ;;  %v581_v44 = vpack.c.bf16 %v239_v41, %v235_v38  ;;  %v234_v45 = vld [vmem:[#allocation5 + $0xd0] sm:$0xff]  ;;  %v207_v50 = vld [vmem:[%s952_s9 + $0x8] sm:$0xff] }
  0x61   : > { %578 = vmatprep.subr.bf16.mxu1 %v577_v31  ;;  %v238_v46 = vld [vmem:[#allocation5 + $0xf0] sm:$0xff]  ;;  %v567_v47 = vpack.c.bf16 %v236_v43, %v232_v42  ;;  %v240_v54 = vld [vmem:[%s1024_s2] sm:$0xf]  ;;  %p717_p7 = pnand %p716_p3, %p710_p8 }
  0x62   : > { %v583_v48 = vpack.c.bf16 %v238_v46, %v234_v45  ;;  %v206_v49 = vld [vmem:[%s952_s9] sm:$0xff]  ;;  %v245_v58 = vrot.slane %v240_v54, %v244_v53  ;;  %v253_v59 = vrot.slane %v240_v54, %v252_v55  ;;  %v249_v60 = vrot.slane %v240_v54, %v248_v56 }
  0x63   : > { %564 = vmatpush1.bf16.msra.mxu0 %v563_v35  ;;  %v257_v61 = vrot.slane %v240_v54, %v256_v57 }
  0x64   : > { %580 = vmatpush1.bf16.msra.mxu1 %v579_v39  ;;  %566 = vmatprep.subr.bf16.mxu0 %v565_v40 }
  0x65   : > { %582 = vmatprep.subr.bf16.mxu1 %v581_v44 }
  0x67   : > { %568 = vmatpush1.bf16.msra.mxu0 %v567_v47 }
  0x68   : > { %584 = vmatpush1.bf16.msra.mxu1 %v583_v48 }
  0x6a   : > { %540 = vmatmul.mubr.msk.f32.vlgmr.msra.gmra.mrb[0].mxu0 %vm262_vm0, %v206_v49 }
  0x6b   : > { %542 = vmatmul.mubr.msk.f32.vlgmr.msra.gmra.mrb[0].mxu1 %vm262_vm0, %v206_v49  ;;  %339 = vmatprep.mubr.f32.mxu0 %v785_v0 }
  0x6c   : > { %416 = vmatprep.mubr.f32.mxu1 %v785_v0 }
  0x6e   : > { %541 = vmatmul.mubr.msk.f32.gmra.mrb[2].mxu0 %vm262_vm0, %v207_v50 }
  0x6f   : > { %543 = vmatmul.mubr.msk.f32.gmra.mrb[2].mxu1 %vm262_vm0, %v207_v50 }
 0x13d   : > { %v335_v62 = vpop.f32.mrb[0].mxu0 }
 0x13e   : > { %v336_v63 = vadd.f32 %v335_v62, %v245_v58  ;;  %v412_v0 = vpop.f32.mrb[0].mxu1  ;;  %v337_v1 = vpop.f32.mrb[1].mxu0 }
 0x13f   : > { %v413_v2 = vadd.f32 %v412_v0, %v253_v59  ;;  %v338_v3 = vadd.f32 %v337_v1, %v249_v60  ;;  %v414_v4 = vpop.f32.mrb[1].mxu1 }
 0x140   : > { %423 = vst [vmem:[%s203_s25] sm:$0xff] %v336_v63  ;;  %v415_v5 = vadd.f32 %v414_v4, %v257_v61 }
 0x141   : > { %425 = vst [vmem:[%s203_s25 + $0x10] sm:$0xff] %v413_v2  ;;  %424 = vst [vmem:[%s203_s25 + $0x8] sm:$0xff] %v338_v3  ;;  %v341_v6 = vpop.f32.mrb[2].mxu0 }
 0x142   : > { %426 = vst [vmem:[%s203_s25 + $0x18] sm:$0xff] %v415_v5  ;;  %v342_v7 = vadd.f32 %v341_v6, %v245_v58  ;;  %v418_v8 = vpop.f32.mrb[2].mxu1  ;;  %v343_v9 = vpop.f32.mrb[3].mxu0 }
 0x143   : > { %v419_v10 = vadd.f32 %v418_v8, %v253_v59  ;;  %v344_v11 = vadd.f32 %v343_v9, %v249_v60  ;;  %v420_v12 = vpop.f32.mrb[3].mxu1 }
 0x144   : > { %427 = vst [vmem:[%s203_s25 + $0x20] sm:$0xff] %v342_v7  ;;  %v421_v13 = vadd.f32 %v420_v12, %v257_v61 }
 0x145   : > { %429 = vst [vmem:[%s203_s25 + $0x30] sm:$0xff] %v419_v10  ;;  %428 = vst [vmem:[%s203_s25 + $0x28] sm:$0xff] %v344_v11 }
 0x146   : > { %430 = vst [vmem:[%s203_s25 + $0x38] sm:$0xff] %v421_v13 }
 0x147   : > { %720 = shalt.err (!%p717_p7)
}
 0x148   : > { %s721_s22 = scalar_lea.hbm %s978_s16, 1024  ;;  %s725_s9 = scalar_lea.hbm %s1025_s3, 2048 }
 0x149   : > { %p722_p9 = scmp.ne.s32.totalorder %s978_s16, %s721_s22  ;;  %p726_p5 = scmp.lt.u32.totalorder %s978_s16, %s1025_s3 }
 0x14a   : > { %p727_p11 = scmp.lt.u32.totalorder %s725_s9, %s721_s22  ;;  %p729_p4 = scmp.lt.u32.totalorder %s721_s22, %s978_s16 }
 0x14b   : > { %p723_p2 = pnand %p722_p9, %p900_p12 }
 0x14c   : > { %p728_p1 = por %p727_p11, %p726_p5 }
 0x14d   : > { %p724_p0 = pneg %p723_p2 }
 0x14e   : > { %p730_p6 = por %p729_p4, %p728_p1 }
 0x150   : > { %p731_p8 = pnand %p730_p6, %p724_p0 }
 0x152   : > { %734 = shalt.err (!%p731_p8)
}
 0x153   : > { %s787_s4 = smov 512   ;;  %s788_s25 = smov 32  }
 0x154   : > { %591 = dma.vmem_to_hbm [thread:$0]  (%p900_p12), %s973_s26, 1024, %s978_s16, %s432_s27, %s787_s4, %s787_s4, %s788_s25  }
 0x155 PF: > { %s461_s5 = sand.u32 1, %s765_s12   ;;  %p1040_p10 = scmp.ne.s32.totalorder %s1030_s19, 0 }
 0x156   : > { %p1041_p13 = scmp.ge.s32.totalorder %s777_s15, 2  ;;  %s462_s10 = scalar_lea.sflag [#allocation4], %s461_s5 }
 0x158   : > { %p602_p3 = pnand %p1041_p13, %p1040_p10 }
 0x15a   : > { %760 = dma.done.wait (!%p602_p3), %s462_s10, 1024  }
 0x15b   : > { %762 = vsyncadd (!%p602_p3), %s462_s10, 4294966272  ;;  %p17_p7 = scmp.ge.s32.totalorder %s865_s24, 4   ;;  %s1042_s12 = smov %s769_s13 }
 0x15c   : > { %s1043_s13 = smov %s773_s14  ;;  %s1044_s14 = smov %s896_s17 }
 0x15d   : > { %s1045_s15 = smov %s865_s24  ;;  %19 = sbr.rel (!%p17_p7) target bundleno = 6 (0x6), region = 81 }
 0x164   :  { %467 = vsyncpa [#allocation3], 1 }
 0x165   :  { %469 = vsyncpa [#allocation3 + $0x1], 1 }
 0x166   :  { %470 = vsyncpa [#allocation6], 1 }
 0x167   :  { %471 = vsyncpa [#allocation4], 1 }
 0x168   :  { %473 = vsyncpa [#allocation4 + $0x1], 1 }

</bundles_post_ra>
